<compile_context>
chip_gen: v5e
topology: v5e:2x2
jax: 0.10.0
libtpu: 0.0.40
codegen_flags: <defaults>
</compile_context>

<pallas_src>
import functools

import jax
import jax.numpy as jnp
from jax import lax
from jax.experimental import pallas as pl
from jax.experimental.pallas import tpu as pltpu


def _normalize_kernel(img_ref, out_ref, *, min_val, inv_range, split):
    # img_ref / out_ref: (C, TN) tile, C on sublanes, flattened H*W on lanes.
    x = img_ref[...]
    c_idx = lax.broadcasted_iota(jnp.int32, x.shape, 0)          # channel index per element
    normed = ((x - min_val) * inv_range).astype(x.dtype)         # (x - min) / (max - min)
    out_ref[...] = jnp.where(c_idx < split, normed, x)           # last `num_labels` channels untouched


def normalize_image_to_dataset(image, min_dataset, max_dataset, num_labels):
    """JAX/Pallas equivalent of NormalizeImage_to_dataset.forward for a (C, H, W) image."""
    C, H, W = image.shape
    HW = H * W
    split = C - num_labels
    x2d = image.reshape(C, HW)                 # lane-dense layout: last dim is H*W
    itemsize = x2d.dtype.itemsize

    # Tile choice: whole row block unless it would not fit comfortably in VMEM
    # (budget kept well under the v7x 64 MiB limit even with in+out double buffering).
    vmem_budget = 8 * 1024 * 1024
    tn = HW
    if HW % 128 == 0:
        max_tn = max(128, (vmem_budget // (C * itemsize)) // 128 * 128)
        tn = min(HW, max_tn)
    grid = (pl.cdiv(HW, tn),)

    kernel = functools.partial(
        _normalize_kernel,
        min_val=float(min_dataset),
        inv_range=1.0 / (float(max_dataset) - float(min_dataset)),
        split=int(split),
    )

    out2d = pl.pallas_call(
        kernel,
        out_shape=jax.ShapeDtypeStruct((C, HW), x2d.dtype),
        grid_spec=pltpu.PrefetchScalarGridSpec(
            num_scalar_prefetch=0,
            grid=grid,
            in_specs=[pl.BlockSpec((C, tn), lambda j: (0, j))],
            out_specs=pl.BlockSpec((C, tn), lambda j: (0, j)),
        ),
        compiler_params=pltpu.CompilerParams(
            dimension_semantics=("parallel",),
        ),
        cost_estimate=pl.CostEstimate(
            flops=2 * C * HW,
            transcendentals=0,
            bytes_accessed=2 * C * HW * itemsize,
        ),
    )(x2d)

    return out2d.reshape(C, H, W)


if __name__ == "__main__":
    key = jax.random.PRNGKey(0)

    # 4 data channels + 2 label channels, 16x16 spatial.
    C, H, W = 6, 16, 16
    num_labels = 2
    min_dataset, max_dataset = -1.0, 3.0

    image = jax.random.uniform(
        key, (C, H, W), jnp.float32, minval=min_dataset, maxval=max_dataset
    )

    out = normalize_image_to_dataset(image, min_dataset, max_dataset, num_labels)
    out = jax.block_until_ready(out)

    # Pure-JAX reference mirroring the PyTorch forward.
    sample = image[:-num_labels]
    targets = image[-num_labels:]
    ref = jnp.concatenate(
        ((sample - min_dataset) / (max_dataset - min_dataset), targets), axis=0
    )

    assert out.shape == image.shape and out.dtype == image.dtype
    assert float(jnp.max(jnp.abs(out - ref))) < 1e-6

    print("KERNEL_OK")
</pallas_src>

<mosaic_0001>
module attributes {stable_mosaic.version = 11 : i64} {
  func.func @_normalize_kernel(%arg0: i32, %arg1: memref<6x256xf32, #tpu.memory_space<vmem>>, %arg2: memref<6x256xf32, #tpu.memory_space<vmem>>) attributes {dimension_semantics = [#tpu.dimension_semantics<parallel>], iteration_bounds = array<i64: 1>, scalar_prefetch = 0 : i64, scratch_operands = 0 : i64, tpu.core_type = #tpu.core_type<tc>, window_params = [{transform_indices = @transform_0, window_bounds = array<i64: 6, 256>}, {transform_indices = @transform_1, window_bounds = array<i64: 6, 256>}]} {
    %c0 = arith.constant 0 : index
    %c0_0 = arith.constant 0 : index
    %0 = vector.load %arg1[%c0, %c0_0] : memref<6x256xf32, #tpu.memory_space<vmem>>, vector<6x256xf32>
    %1 = tpu.iota {dimensions = array<i32: 0>} : vector<6x256xi32>
    %cst = arith.constant -1.000000e+00 : f32
    %2 = vector.broadcast %cst : f32 to vector<6x256xf32>
    %3 = arith.subf %0, %2 : vector<6x256xf32>
    %cst_1 = arith.constant 2.500000e-01 : f32
    %4 = vector.broadcast %cst_1 : f32 to vector<6x256xf32>
    %5 = arith.mulf %3, %4 : vector<6x256xf32>
    %c4_i32 = arith.constant 4 : i32
    %6 = vector.broadcast %c4_i32 : i32 to vector<6x256xi32>
    %7 = arith.cmpi slt, %1, %6 : vector<6x256xi32>
    %8 = arith.select %7, %5, %0 : vector<6x256xi1>, vector<6x256xf32>
    %c0_2 = arith.constant 0 : index
    %c0_3 = arith.constant 0 : index
    %9 = vector.load %arg2[%c0_2, %c0_3] : memref<6x256xf32, #tpu.memory_space<vmem>>, vector<6x256xf32>
    tpu.vector_store %arg2[%c0_2, %c0_3], %8 {strides = array<i32>} : memref<6x256xf32, #tpu.memory_space<vmem>>, vector<6x256xf32>,
    return
  }
  func.func @transform_0(%arg0: i32) -> (i32, i32) {
    %c0_i32 = arith.constant 0 : i32
    %c0_i32_0 = arith.constant 0 : i32
    return %c0_i32, %arg0 : i32, i32
  }
  func.func @transform_1(%arg0: i32) -> (i32, i32) {
    %c0_i32 = arith.constant 0 : i32
    %c0_i32_0 = arith.constant 0 : i32
    return %c0_i32, %arg0 : i32, i32
  }
}

</mosaic_0001>

<bundles_post_ra>
// kernel: tpu_custom_call.1
= control target key start
LH: loop header
LB: loop body
LE: loop exit
PB: predicated region body
PF: predicated region fallthrough
CT: control target
= control target key end

     0   :  { %6 = vsyncpa [#allocation3], 0  ;;  %s127_s0 = inlined_call_operand.hbm [shape: f32[6,256], index: 0, kind: input, shape index: {}]   ;;  %s128_s1 = inlined_call_operand.hbm [shape: f32[6,256], index: 1, kind: output, shape index: {}]  }
   0x1   :  { %7 = vsyncpa [#allocation4], 0  ;;  %s13_s8 = sshll.u32 %s127_s0, 4  ;;  %s109_s9 = smov [#allocation2]   ;;  %s14_s8 = int_to_ptr.hbm [resolvable:$true] %s13_s8 }
   0x2   :  { %s15_s10 = sshll.u32 %s109_s9, 4  ;;  %s16_s10 = int_to_ptr.vmem [resolvable:$true] %s15_s10 }
   0x3   :  { %18 = dma.hbm_to_vmem [thread:$0]  %s14_s8, 256, %s16_s10, [#allocation3]  }
   0x4   :  { %105 = dma.done.wait [#allocation3], 256  }
   0x5   :  { %106 = vsyncadd [#allocation3], 4294967040  ;;  %v25_v0 = vlaneseq  ;;  %v23_v2 = vld [vmem:[#allocation2] sm:$0x3f]  ;;  %v24_v3 = vld [vmem:[#allocation2 + $0x8] sm:$0x3f] }
   0x6   :  { %v53_v4 = vadd.f32 1.0, %v23_v2  ;;  %v54_v5 = vadd.f32 1.0, %v24_v3  ;;  %s110_s11 = smov [#allocation5]   ;;  %s43_s0 = sshll.u32 %s128_s1, 4  ;;  %s44_s0 = int_to_ptr.hbm [resolvable:$true] %s43_s0 }
   0x7   :  { %v26_v1 = vshrl.u32 %v25_v0, 7  ;;  %s41_s12 = sshll.u32 %s110_s11, 4  ;;  %s42_s12 = int_to_ptr.vmem [resolvable:$true] %s41_s12 }
   0x8   :  { %v29_v6 = vmul.f32 0.25, %v53_v4  ;;  %v30_v7 = vmul.f32 0.25, %v54_v5 }
   0x9   :  { %vm31_vm0 = vcmp.lt.s32.totalorder %v26_v1, 4 }
   0xa   :  { %v32_v8 = vsel %vm31_vm0, %v29_v6, %v23_v2  ;;  %v33_v9 = vsel %vm31_vm0, %v30_v7, %v24_v3 }
   0xb   :  { %34 = vst [vmem:[#allocation5] sm:$0x3f] %v32_v8 }
   0xc   :  { %35 = vst [vmem:[#allocation5 + $0x8] sm:$0x3f] %v33_v9 }
   0xd   :  { %46 = dma.vmem_to_hbm [thread:$0]  %s42_s12, 256, %s44_s0, [#allocation4]  }
   0xe   :  { %107 = dma.done.wait [#allocation4], 256  }
   0xf   :  { %108 = vsyncadd [#allocation4], 4294967040 }
  0x10   :  { %51 = vsyncpa [#allocation3], 1 }
  0x11   :  { %52 = vsyncpa [#allocation4], 1 }

</bundles_post_ra>
